<compile_context>
chip_gen: v5e
topology: v5e:2x2
jax: 0.10.0
libtpu: 0.0.40
codegen_flags: <defaults>
</compile_context>

<pallas_src>
import jax
import jax.numpy as jnp
from jax.experimental import pallas as pl
from jax.experimental.pallas import tpu as pltpu


def mlp_kernel(x_ref, w1_ref, b1_ref, w2_ref, b2_ref, w3_ref, b3_ref, o_ref):
    # x arrives in its original float dtype; cast to bf16 in-kernel (avoids a
    # separate XLA pad+cast pass over HBM in the wrapper).
    x = x_ref[...].astype(jnp.bfloat16)

    # fc1 + ReLU  (bf16 MXU operands, f32 accumulate)
    h1 = jnp.dot(x, w1_ref[...], preferred_element_type=jnp.float32) + b1_ref[...]
    h1 = jnp.maximum(h1, 0.0).astype(jnp.bfloat16)

    # fc2 + ReLU
    h2 = jnp.dot(h1, w2_ref[...], preferred_element_type=jnp.float32) + b2_ref[...]
    h2 = jnp.maximum(h2, 0.0)

    # fc3 (out_dim = 1): VPU multiply + XLU lane reduction instead of a width-1
    # MXU matmul; b3 is an SMEM scalar.
    out = jnp.sum(h2 * w3_ref[...], axis=-1, keepdims=True) + b3_ref[0]
    o_ref[...] = out.astype(o_ref.dtype)


def _round_up(n, m):
    return ((n + m - 1) // m) * m


def _choose_row_tile(N, D, H, *, tm_max=1024, vmem_budget=48 * 2**20):
    """Balanced row-tile size and padded row count.

    Caps the tile so resident weights + streamed activations fit a conservative
    VMEM budget (v7x has only 64 MiB per TensorCore), and keeps the grid at
    >= 2 steps whenever there is enough work so both v7x TensorCores are used.
    """
    lane, sublane = 128, 8

    # Resident (single-buffered) weight footprint: bf16 w1, w2 + f32 b1, b2, w3.
    weight_bytes = 2 * D * D + 2 * D * H + 4 * (D + 2 * H)
    # Per-row footprint: f32 x tile (double-buffered) + h1 f32/bf16 + h2 f32
    # (+ elementwise temps) + lane-padded (tm, 1) output block.
    per_row = 8 * max(D, lane) + 6 * max(D, lane) + 8 * max(H, lane) + 8 * lane
    avail = max(vmem_budget - weight_bytes, per_row * lane)
    tm_cap = max((avail // per_row) // lane * lane, lane)
    # TODO(synk): if weight_bytes alone blows the budget (D >= ~4096 on v7x),
    # K-tile w1/w2 instead of shrinking tm.
    tm_max = max(min(tm_max, tm_cap), sublane)

    if N <= 0:
        return sublane, sublane
    if N < 2 * lane:
        # Single small tile: pad rows only to the sublane granule (8).
        tm = _round_up(N, sublane)
        return tm, tm
    # Balanced tiles; force >= 2 grid steps so both v7x TensorCores get work.
    n_tiles = max(pl.cdiv(N, tm_max), 2)
    tm = min(tm_max, _round_up(pl.cdiv(N, n_tiles), lane))
    n_pad = _round_up(N, tm)
    return tm, n_pad


def _vmem_limit_bytes(tm, D, H, *, weight_buffers=1):
    lane = 128
    weights = weight_buffers * (2 * D * D + 2 * D * H) + 2 * 4 * (D + 2 * H)
    x_stream = 2 * tm * max(D, lane) * 4            # double-buffered input tile
    out_stream = 2 * tm * lane * 4                  # (tm, 1) block, lane-padded
    interm = tm * (6 * max(D, lane) + 8 * max(H, lane))  # h1 f32+bf16, h2 f32 + temps
    est = weights + x_stream + out_stream + interm
    # Floor at the default-ish 32 MiB, cap at 64 MiB (safe on v5e/v6e/v7x).
    return int(min(64 * 2**20, max(32 * 2**20, (est * 3) // 2)))


def mlp_forward(input_embeddings, params, *, tm_max=1024):
    """Pallas implementation of MLP.forward.

    input_embeddings: any shape whose total size is a multiple of input_dim
                      (matches torch's .view(-1, input_dim)).
    params: dict with w1 (D,D), b1 (D,), w2 (D/2,D), b2 (D/2,), w3 (1,D/2), b3 (1,)
            in PyTorch nn.Linear convention (weight shape = (out, in)).
    Returns: squeezed output, matching torch's .squeeze().
    """
    w1, b1 = params["w1"], params["b1"]
    w2, b2 = params["w2"], params["b2"]
    w3, b3 = params["w3"], params["b3"]

    D = w1.shape[1]
    H = w2.shape[0]

    x = input_embeddings.reshape(-1, D)
    N = x.shape[0]

    tm, n_pad = _choose_row_tile(N, D, H, tm_max=tm_max)

    # Pad rows only when needed; the activation stream keeps its original dtype
    # (the bf16 cast happens inside the kernel).
    x_p = x if n_pad == N else jnp.pad(x, ((0, n_pad - N), (0, 0)))

    # Weight prep (one-time layout plumbing): pre-transpose so the kernel does
    # plain row-major matmuls. MXU operands in bf16, biases/w3 in f32.
    w1_t = w1.T.astype(jnp.bfloat16)              # (D, D)
    w2_t = w2.T.astype(jnp.bfloat16)              # (D, H)
    b1_r = b1.reshape(1, D).astype(jnp.float32)   # (1, D)
    b2_r = b2.reshape(1, H).astype(jnp.float32)   # (1, H)
    w3_r = w3.reshape(1, H).astype(jnp.float32)   # (1, H)  -- fc3 as reduction
    b3_s = b3.reshape(1).astype(jnp.float32)      # (1,)    -- SMEM scalar

    grid = (n_pad // tm,)

    def build_in_specs(single_buffer_weights):
        # Constant-index operands get a single VMEM buffer instead of the
        # default double buffer (their block never changes across the grid).
        resident_kw = (
            dict(pipeline_mode=pl.Buffered(1)) if single_buffer_weights else {}
        )
        return [
            pl.BlockSpec((tm, D), lambda i: (i, 0)),                 # x row tile
            pl.BlockSpec((D, D), lambda i: (0, 0), **resident_kw),   # w1^T (resident)
            pl.BlockSpec((1, D), lambda i: (0, 0), **resident_kw),   # b1
            pl.BlockSpec((D, H), lambda i: (0, 0), **resident_kw),   # w2^T (resident)
            pl.BlockSpec((1, H), lambda i: (0, 0), **resident_kw),   # b2
            pl.BlockSpec((1, H), lambda i: (0, 0), **resident_kw),   # w3 row
            pl.BlockSpec(memory_space=pltpu.MemorySpace.SMEM),       # b3 scalar
        ]

    def run(single_buffer_weights):
        return pl.pallas_call(
            mlp_kernel,
            out_shape=jax.ShapeDtypeStruct((n_pad, 1), jnp.float32),
            grid_spec=pltpu.PrefetchScalarGridSpec(
                num_scalar_prefetch=0,
                grid=grid,
                in_specs=build_in_specs(single_buffer_weights),
                out_specs=pl.BlockSpec((tm, 1), lambda i: (i, 0)),
            ),
            compiler_params=pltpu.CompilerParams(
                dimension_semantics=("parallel",),
                vmem_limit_bytes=_vmem_limit_bytes(
                    tm, D, H, weight_buffers=1 if single_buffer_weights else 2
                ),
            ),
        )(x_p, w1_t, b1_r, w2_t, b2_r, w3_r, b3_s)

    try:
        out = run(True)
    except Exception:
        # TODO(synk): pipeline_mode=pl.Buffered(1) rejected by this jax build;
        # falling back to default double-buffered resident weights.
        out = run(False)

    # Drop padded rows; matches torch's .squeeze()
    return jnp.squeeze(out[:N])


def init_params(key, input_dim):
    """Deterministic init mimicking nn.Linear's uniform(-1/sqrt(in), 1/sqrt(in))."""
    D = input_dim
    H = D // 2
    ks = jax.random.split(key, 6)

    def lin(kw, kb, out_dim, in_dim):
        bound = 1.0 / jnp.sqrt(in_dim)
        w = jax.random.uniform(kw, (out_dim, in_dim), jnp.float32, -bound, bound)
        b = jax.random.uniform(kb, (out_dim,), jnp.float32, -bound, bound)
        return w, b

    w1, b1 = lin(ks[0], ks[1], D, D)
    w2, b2 = lin(ks[2], ks[3], H, D)
    w3, b3 = lin(ks[4], ks[5], 1, H)
    return {"w1": w1, "b1": b1, "w2": w2, "b2": b2, "w3": w3, "b3": b3}


def mlp_reference(input_embeddings, params):
    D = params["w1"].shape[1]
    x = input_embeddings.reshape(-1, D).astype(jnp.float32)
    h1 = jnp.maximum(x @ params["w1"].T + params["b1"], 0.0)
    h2 = jnp.maximum(h1 @ params["w2"].T + params["b2"], 0.0)
    out = h2 @ params["w3"].T + params["b3"]
    return jnp.squeeze(out)


if __name__ == "__main__":
    key = jax.random.PRNGKey(0)
    k_param, k_x = jax.random.split(key)

    input_dim = 32
    batch = 8

    params = init_params(k_param, input_dim)
    # input_embeddings can be any shape flattening to (-1, input_dim).
    x = jax.random.normal(k_x, (batch, input_dim), jnp.float32)

    y = mlp_forward(x, params)
    y = jax.block_until_ready(y)

    y_ref = mlp_reference(x, params)
    assert y.shape == y_ref.shape == (batch,)
    # bf16 MXU operands with f32 accumulation -> loosened tolerance vs f32 reference.
    assert jnp.allclose(y, y_ref, atol=2e-2, rtol=2e-2), (y, y_ref)

    print("KERNEL_OK")
</pallas_src>

<mosaic_0001>
module attributes {stable_mosaic.version = 11 : i64} {
  func.func @mlp_kernel(%arg0: i32, %arg1: memref<8x32xf32, #tpu.memory_space<vmem>>, %arg2: memref<32x32xbf16, #tpu.memory_space<vmem>>, %arg3: memref<1x32xf32, #tpu.memory_space<vmem>>, %arg4: memref<32x16xbf16, #tpu.memory_space<vmem>>, %arg5: memref<1x16xf32, #tpu.memory_space<vmem>>, %arg6: memref<1x16xf32, #tpu.memory_space<vmem>>, %arg7: memref<1xf32, #tpu.memory_space<smem>>, %arg8: memref<8x1xf32, #tpu.memory_space<vmem>>) attributes {dimension_semantics = [#tpu.dimension_semantics<parallel>], iteration_bounds = array<i64: 1>, scalar_prefetch = 0 : i64, scratch_operands = 0 : i64, tpu.core_type = #tpu.core_type<tc>, window_params = [{transform_indices = @transform_0, window_bounds = array<i64: 8, 32>}, {pipeline_mode = #tpu.pipeline_mode<synchronous>, transform_indices = @transform_1, window_bounds = array<i64: 32, 32>}, {pipeline_mode = #tpu.pipeline_mode<synchronous>, transform_indices = @transform_2, window_bounds = array<i64: 1, 32>}, {pipeline_mode = #tpu.pipeline_mode<synchronous>, transform_indices = @transform_3, window_bounds = array<i64: 32, 16>}, {pipeline_mode = #tpu.pipeline_mode<synchronous>, transform_indices = @transform_4, window_bounds = array<i64: 1, 16>}, {pipeline_mode = #tpu.pipeline_mode<synchronous>, transform_indices = @transform_5, window_bounds = array<i64: 1, 16>}, {transform_indices = @transform_6, window_bounds = array<i64: 1>}, {transform_indices = @transform_7, window_bounds = array<i64: 8, 1>}]} {
    %c0 = arith.constant 0 : index
    %c0_0 = arith.constant 0 : index
    %0 = vector.load %arg1[%c0, %c0_0] : memref<8x32xf32, #tpu.memory_space<vmem>>, vector<8x32xf32>
    %1 = arith.truncf %0 : vector<8x32xf32> to vector<8x32xbf16>
    %c0_1 = arith.constant 0 : index
    %c0_2 = arith.constant 0 : index
    %2 = vector.load %arg2[%c0_1, %c0_2] : memref<32x32xbf16, #tpu.memory_space<vmem>>, vector<32x32xbf16>
    %cst = arith.constant dense<0.000000e+00> : vector<8x32xf32>
    %3 = tpu.matmul %1, %2, %cst {dimension_numbers = #tpu.dot_dimension_numbers<[1], [0], [0], [1], [0, 0, 1, 1], [], []>} : vector<8x32xbf16>, vector<32x32xbf16>, vector<8x32xf32> -> vector<8x32xf32>
    %c0_3 = arith.constant 0 : index
    %c0_4 = arith.constant 0 : index
    %4 = vector.load %arg3[%c0_3, %c0_4] : memref<1x32xf32, #tpu.memory_space<vmem>>, vector<1x32xf32>
    %5 = vector.broadcast %4 : vector<1x32xf32> to vector<8x32xf32>
    %6 = arith.addf %3, %5 : vector<8x32xf32>
    %cst_5 = arith.constant 0.000000e+00 : f32
    %7 = vector.broadcast %cst_5 : f32 to vector<8x32xf32>
    %8 = arith.maximumf %6, %7 : vector<8x32xf32>
    %9 = arith.truncf %8 : vector<8x32xf32> to vector<8x32xbf16>
    %c0_6 = arith.constant 0 : index
    %c0_7 = arith.constant 0 : index
    %10 = vector.load %arg4[%c0_6, %c0_7] : memref<32x16xbf16, #tpu.memory_space<vmem>>, vector<32x16xbf16>
    %cst_8 = arith.constant dense<0.000000e+00> : vector<8x16xf32>
    %11 = tpu.matmul %9, %10, %cst_8 {dimension_numbers = #tpu.dot_dimension_numbers<[1], [0], [0], [1], [0, 0, 1, 1], [], []>} : vector<8x32xbf16>, vector<32x16xbf16>, vector<8x16xf32> -> vector<8x16xf32>
    %c0_9 = arith.constant 0 : index
    %c0_10 = arith.constant 0 : index
    %12 = vector.load %arg5[%c0_9, %c0_10] : memref<1x16xf32, #tpu.memory_space<vmem>>, vector<1x16xf32>
    %13 = vector.broadcast %12 : vector<1x16xf32> to vector<8x16xf32>
    %14 = arith.addf %11, %13 : vector<8x16xf32>
    %cst_11 = arith.constant 0.000000e+00 : f32
    %15 = vector.broadcast %cst_11 : f32 to vector<8x16xf32>
    %16 = arith.maximumf %14, %15 : vector<8x16xf32>
    %c0_12 = arith.constant 0 : index
    %c0_13 = arith.constant 0 : index
    %17 = vector.load %arg6[%c0_12, %c0_13] : memref<1x16xf32, #tpu.memory_space<vmem>>, vector<1x16xf32>
    %18 = vector.broadcast %17 : vector<1x16xf32> to vector<8x16xf32>
    %19 = arith.mulf %16, %18 : vector<8x16xf32>
    %cst_14 = arith.constant dense<0.000000e+00> : vector<8xf32>
    %20 = vector.multi_reduction <add>, %19, %cst_14 [1] : vector<8x16xf32> to vector<8xf32>
    %21 = vector.shape_cast %20 : vector<8xf32> to vector<8x1xf32>
    %c0_15 = arith.constant 0 : index
    %22 = memref.load %arg7[%c0_15] : memref<1xf32, #tpu.memory_space<smem>>
    %23 = vector.broadcast %22 : f32 to vector<8x1xf32>
    %24 = arith.addf %21, %23 : vector<8x1xf32>
    %c0_16 = arith.constant 0 : index
    %c0_17 = arith.constant 0 : index
    %25 = vector.load %arg8[%c0_16, %c0_17] : memref<8x1xf32, #tpu.memory_space<vmem>>, vector<8x1xf32>
    tpu.vector_store %arg8[%c0_16, %c0_17], %24 {strides = array<i32>} : memref<8x1xf32, #tpu.memory_space<vmem>>, vector<8x1xf32>,
    return
  }
  func.func @transform_0(%arg0: i32) -> (i32, i32) {
    %c0_i32 = arith.constant 0 : i32
    %c0_i32_0 = arith.constant 0 : i32
    return %arg0, %c0_i32 : i32, i32
  }
  func.func @transform_1(%arg0: i32) -> (i32, i32) {
    %c0_i32 = arith.constant 0 : i32
    %c0_i32_0 = arith.constant 0 : i32
    %c0_i32_1 = arith.constant 0 : i32
    return %c0_i32, %c0_i32_0 : i32, i32
  }
  func.func @transform_2(%arg0: i32) -> (i32, i32) {
    %c0_i32 = arith.constant 0 : i32
    %c0_i32_0 = arith.constant 0 : i32
    %c0_i32_1 = arith.constant 0 : i32
    return %c0_i32, %c0_i32_0 : i32, i32
  }
  func.func @transform_3(%arg0: i32) -> (i32, i32) {
    %c0_i32 = arith.constant 0 : i32
    %c0_i32_0 = arith.constant 0 : i32
    %c0_i32_1 = arith.constant 0 : i32
    return %c0_i32, %c0_i32_0 : i32, i32
  }
  func.func @transform_4(%arg0: i32) -> (i32, i32) {
    %c0_i32 = arith.constant 0 : i32
    %c0_i32_0 = arith.constant 0 : i32
    %c0_i32_1 = arith.constant 0 : i32
    return %c0_i32, %c0_i32_0 : i32, i32
  }
  func.func @transform_5(%arg0: i32) -> (i32, i32) {
    %c0_i32 = arith.constant 0 : i32
    %c0_i32_0 = arith.constant 0 : i32
    %c0_i32_1 = arith.constant 0 : i32
    return %c0_i32, %c0_i32_0 : i32, i32
  }
  func.func @transform_6(%arg0: i32) -> i32 {
    %c0_i32 = arith.constant 0 : i32
    %c0_i32_0 = arith.constant 0 : i32
    return %c0_i32 : i32
  }
  func.func @transform_7(%arg0: i32) -> (i32, i32) {
    %c0_i32 = arith.constant 0 : i32
    %c0_i32_0 = arith.constant 0 : i32
    return %arg0, %c0_i32 : i32, i32
  }
}

module attributes {stable_mosaic.version = 11 : i64} {
  func.func @mlp_kernel(%arg0: i32, %arg1: memref<8x32xf32, #tpu.memory_space<vmem>>, %arg2: memref<32x32xbf16, #tpu.memory_space<vmem>>, %arg3: memref<1x32xf32, #tpu.memory_space<vmem>>, %arg4: memref<32x16xbf16, #tpu.memory_space<vmem>>, %arg5: memref<1x16xf32, #tpu.memory_space<vmem>>, %arg6: memref<1x16xf32, #tpu.memory_space<vmem>>, %arg7: memref<1xf32, #tpu.memory_space<smem>>, %arg8: memref<8x1xf32, #tpu.memory_space<vmem>>) attributes {dimension_semantics = [#tpu.dimension_semantics<parallel>], iteration_bounds = array<i64: 1>, scalar_prefetch = 0 : i64, scratch_operands = 0 : i64, tpu.core_type = #tpu.core_type<tc>, window_params = [{transform_indices = @transform_0, window_bounds = array<i64: 8, 32>}, {pipeline_mode = #tpu.pipeline_mode<synchronous>, transform_indices = @transform_1, window_bounds = array<i64: 32, 32>}, {pipeline_mode = #tpu.pipeline_mode<synchronous>, transform_indices = @transform_2, window_bounds = array<i64: 1, 32>}, {pipeline_mode = #tpu.pipeline_mode<synchronous>, transform_indices = @transform_3, window_bounds = array<i64: 32, 16>}, {pipeline_mode = #tpu.pipeline_mode<synchronous>, transform_indices = @transform_4, window_bounds = array<i64: 1, 16>}, {pipeline_mode = #tpu.pipeline_mode<synchronous>, transform_indices = @transform_5, window_bounds = array<i64: 1, 16>}, {transform_indices = @transform_6, window_bounds = array<i64: 1>}, {transform_indices = @transform_7, window_bounds = array<i64: 8, 1>}]} {
    %c0 = arith.constant 0 : index
    %c0_0 = arith.constant 0 : index
    %0 = vector.load %arg1[%c0, %c0_0] : memref<8x32xf32, #tpu.memory_space<vmem>>, vector<8x32xf32>
    %1 = arith.truncf %0 : vector<8x32xf32> to vector<8x32xbf16>
    %c0_1 = arith.constant 0 : index
    %c0_2 = arith.constant 0 : index
    %2 = vector.load %arg2[%c0_1, %c0_2] : memref<32x32xbf16, #tpu.memory_space<vmem>>, vector<32x32xbf16>
    %cst = arith.constant dense<0.000000e+00> : vector<8x32xf32>
    %3 = tpu.matmul %1, %2, %cst {dimension_numbers = #tpu.dot_dimension_numbers<[1], [0], [0], [1], [0, 0, 1, 1], [], []>} : vector<8x32xbf16>, vector<32x32xbf16>, vector<8x32xf32> -> vector<8x32xf32>
    %c0_3 = arith.constant 0 : index
    %c0_4 = arith.constant 0 : index
    %4 = vector.load %arg3[%c0_3, %c0_4] : memref<1x32xf32, #tpu.memory_space<vmem>>, vector<1x32xf32>
    %5 = vector.broadcast %4 : vector<1x32xf32> to vector<8x32xf32>
    %6 = arith.addf %3, %5 : vector<8x32xf32>
    %cst_5 = arith.constant 0.000000e+00 : f32
    %7 = vector.broadcast %cst_5 : f32 to vector<8x32xf32>
    %8 = arith.maximumf %6, %7 : vector<8x32xf32>
    %9 = arith.truncf %8 : vector<8x32xf32> to vector<8x32xbf16>
    %c0_6 = arith.constant 0 : index
    %c0_7 = arith.constant 0 : index
    %10 = vector.load %arg4[%c0_6, %c0_7] : memref<32x16xbf16, #tpu.memory_space<vmem>>, vector<32x16xbf16>
    %cst_8 = arith.constant dense<0.000000e+00> : vector<8x16xf32>
    %11 = tpu.matmul %9, %10, %cst_8 {dimension_numbers = #tpu.dot_dimension_numbers<[1], [0], [0], [1], [0, 0, 1, 1], [], []>} : vector<8x32xbf16>, vector<32x16xbf16>, vector<8x16xf32> -> vector<8x16xf32>
    %c0_9 = arith.constant 0 : index
    %c0_10 = arith.constant 0 : index
    %12 = vector.load %arg5[%c0_9, %c0_10] : memref<1x16xf32, #tpu.memory_space<vmem>>, vector<1x16xf32>
    %13 = vector.broadcast %12 : vector<1x16xf32> to vector<8x16xf32>
    %14 = arith.addf %11, %13 : vector<8x16xf32>
    %cst_11 = arith.constant 0.000000e+00 : f32
    %15 = vector.broadcast %cst_11 : f32 to vector<8x16xf32>
    %16 = arith.maximumf %14, %15 : vector<8x16xf32>
    %c0_12 = arith.constant 0 : index
    %c0_13 = arith.constant 0 : index
    %17 = vector.load %arg6[%c0_12, %c0_13] : memref<1x16xf32, #tpu.memory_space<vmem>>, vector<1x16xf32>
    %18 = vector.broadcast %17 : vector<1x16xf32> to vector<8x16xf32>
    %19 = arith.mulf %16, %18 : vector<8x16xf32>
    %cst_14 = arith.constant dense<0.000000e+00> : vector<8xf32>
    %20 = vector.multi_reduction <add>, %19, %cst_14 [1] : vector<8x16xf32> to vector<8xf32>
    %21 = vector.shape_cast %20 : vector<8xf32> to vector<8x1xf32>
    %c0_15 = arith.constant 0 : index
    %22 = memref.load %arg7[%c0_15] : memref<1xf32, #tpu.memory_space<smem>>
    %23 = vector.broadcast %22 : f32 to vector<8x1xf32>
    %24 = arith.addf %21, %23 : vector<8x1xf32>
    %c0_16 = arith.constant 0 : index
    %c0_17 = arith.constant 0 : index
    %25 = vector.load %arg8[%c0_16, %c0_17] : memref<8x1xf32, #tpu.memory_space<vmem>>, vector<8x1xf32>
    tpu.vector_store %arg8[%c0_16, %c0_17], %24 {strides = array<i32>} : memref<8x1xf32, #tpu.memory_space<vmem>>, vector<8x1xf32>,
    return
  }
  func.func @transform_0(%arg0: i32) -> (i32, i32) {
    %c0_i32 = arith.constant 0 : i32
    %c0_i32_0 = arith.constant 0 : i32
    return %arg0, %c0_i32 : i32, i32
  }
  func.func @transform_1(%arg0: i32) -> (i32, i32) {
    %c0_i32 = arith.constant 0 : i32
    %c0_i32_0 = arith.constant 0 : i32
    %c0_i32_1 = arith.constant 0 : i32
    return %c0_i32, %c0_i32_0 : i32, i32
  }
  func.func @transform_2(%arg0: i32) -> (i32, i32) {
    %c0_i32 = arith.constant 0 : i32
    %c0_i32_0 = arith.constant 0 : i32
    %c0_i32_1 = arith.constant 0 : i32
    return %c0_i32, %c0_i32_0 : i32, i32
  }
  func.func @transform_3(%arg0: i32) -> (i32, i32) {
    %c0_i32 = arith.constant 0 : i32
    %c0_i32_0 = arith.constant 0 : i32
    %c0_i32_1 = arith.constant 0 : i32
    return %c0_i32, %c0_i32_0 : i32, i32
  }
  func.func @transform_4(%arg0: i32) -> (i32, i32) {
    %c0_i32 = arith.constant 0 : i32
    %c0_i32_0 = arith.constant 0 : i32
    %c0_i32_1 = arith.constant 0 : i32
    return %c0_i32, %c0_i32_0 : i32, i32
  }
  func.func @transform_5(%arg0: i32) -> (i32, i32) {
    %c0_i32 = arith.constant 0 : i32
    %c0_i32_0 = arith.constant 0 : i32
    %c0_i32_1 = arith.constant 0 : i32
    return %c0_i32, %c0_i32_0 : i32, i32
  }
  func.func @transform_6(%arg0: i32) -> i32 {
    %c0_i32 = arith.constant 0 : i32
    %c0_i32_0 = arith.constant 0 : i32
    return %c0_i32 : i32
  }
  func.func @transform_7(%arg0: i32) -> (i32, i32) {
    %c0_i32 = arith.constant 0 : i32
    %c0_i32_0 = arith.constant 0 : i32
    return %arg0, %c0_i32 : i32, i32
  }
}

</mosaic_0001>

<bundles_post_ra>
// kernel: tpu_custom_call.1
= control target key start
LH: loop header
LB: loop body
LE: loop exit
PB: predicated region body
PF: predicated region fallthrough
CT: control target
= control target key end

     0   :  { %vm50_vm0 = vcmask 261120   ;;  %vm111_vm1 = vcmask 130048   ;;  %vm118_vm2 = vcmask 7168   ;;  %s219_s1 = inlined_call_operand.vmem [shape: bf16[32,32], index: 1, kind: input, shape index: {}]   ;;  %s220_s0 = inlined_call_operand.vmem [shape: f32[8,32], index: 0, kind: input, shape index: {}]   ;;  %s221_s2 = inlined_call_operand.vmem [shape: f32[1,32], index: 2, kind: input, shape index: {}]   ;;  %s222_s4 = inlined_call_operand.vmem [shape: f32[1,16], index: 4, kind: input, shape index: {}]   ;;  %s223_s3 = inlined_call_operand.vmem [shape: bf16[32,16], index: 3, kind: input, shape index: {}]   ;;  %s224_s5 = inlined_call_operand.vmem [shape: f32[1,16], index: 5, kind: input, shape index: {}]   ;;  %s225_s6 = inlined_call_operand.<no memory space> [shape: f32[1], index: 6, kind: input, shape index: {}]   ;;  %s226_s7 = inlined_call_operand.vmem [shape: f32[8,1], index: 7, kind: output, shape index: {}]  }
   0x1   :  { %v143_v0 = vld [vmem:[%s219_s1 + $0x8] sm:$0xff]  ;;  %v142_v1 = vld [vmem:[%s219_s1] sm:$0xff]  ;;  %v116_v20 = vstv %s225_s6 }
   0x2   :  { %60 = vmatpush.bf16.msra.mxu0 %v143_v0  ;;  %v28_v2 = vld [vmem:[%s220_s0] sm:$0xff]  ;;  %v145_v4 = vld [vmem:[%s223_s3 + $0x8] sm:$0xff] }
   0x3   :  { %v29_v3 = vpack.c.bf16 %v28_v2, %v28_v2  ;;  %98 = vmatpush.bf16.msra.mxu1 %v145_v4  ;;  %v144_v5 = vld [vmem:[%s223_s3] sm:$0xff] }
   0x4   :  { %v146_v6 = vld [vmem:[%s221_s2] ss:$0 sm:$0xff] }
   0x5   :  { %v147_v12 = vld [vmem:[%s222_s4] ss:$0 sm:$0xff] }
   0x6   :  { %61 = vmatpush.bf16.msra.mxu0 %v142_v1  ;;  %v148_v15 = vld [vmem:[%s224_s5] ss:$0 sm:$0xff] }
   0x7   :  { %99 = vmatpush.bf16.msra.mxu1 %v144_v5 }
   0x9   :  { %132 = vmatmul.msk.bf16.vlgmr.msra.gmra.mxu0 %vm50_vm0, %v29_v3 }
  0x86   :  { %v63_v7 = vpop.f32.mrf.mxu0 }
  0x87   :  { %v64_v8 = vadd.f32 %v146_v6, %v63_v7 }
  0x89   :  { %v67_v9 = vmax.f32 %v64_v8, 0.0 }
  0x8b   :  { %v68_v10 = vpack.c.bf16 %v67_v9, %v67_v9 }
  0x8d   :  { %141 = vmatmul.msk.bf16.vlgmr.msra.gmra.mxu1 %vm50_vm0, %v68_v10 }
  0x8e   :  { %v65_v11 = vpop.f32.mrf.mxu0 }
 0x10a   :  { %v101_v13 = vpop.f32.mrf.mxu1 }
 0x10b   :  { %v102_v14 = vadd.f32 %v147_v12, %v101_v13 }
 0x10d   :  { %v105_v16 = vmax.f32 %v102_v14, 0.0 }
 0x10f   :  { %v110_v17 = vmul.f32 %v148_v15, %v105_v16 }
 0x111   :  { %v112_v18 = vsel %vm111_vm1, %v110_v17, 0.0 }
 0x112   :  { %v103_v19 = vpop.f32.mrf.mxu1  ;;  %113 = vadd.xlane.f32.xlu0 %v112_v18 }
 0x185   :  { %v114_v21 = vpop.xlane.xlu0 %113 }
 0x186   :  { %v117_v22 = vadd.f32 %v116_v20, %v114_v21 }
 0x188   :  { %119 = vst.msk [vmem:[%s226_s7] sm:$0xff] %vm118_vm2, %v117_v22 }

// kernel: tpu_custom_call.1
= control target key start
LH: loop header
LB: loop body
LE: loop exit
PB: predicated region body
PF: predicated region fallthrough
CT: control target
= control target key end

     0   :  { %vm50_vm0 = vcmask 261120   ;;  %vm111_vm1 = vcmask 130048   ;;  %vm118_vm2 = vcmask 7168   ;;  %s219_s1 = inlined_call_operand.vmem [shape: bf16[32,32], index: 1, kind: input, shape index: {}]   ;;  %s220_s0 = inlined_call_operand.vmem [shape: f32[8,32], index: 0, kind: input, shape index: {}]   ;;  %s221_s2 = inlined_call_operand.vmem [shape: f32[1,32], index: 2, kind: input, shape index: {}]   ;;  %s222_s4 = inlined_call_operand.vmem [shape: f32[1,16], index: 4, kind: input, shape index: {}]   ;;  %s223_s3 = inlined_call_operand.vmem [shape: bf16[32,16], index: 3, kind: input, shape index: {}]   ;;  %s224_s5 = inlined_call_operand.vmem [shape: f32[1,16], index: 5, kind: input, shape index: {}]   ;;  %s225_s6 = inlined_call_operand.<no memory space> [shape: f32[1], index: 6, kind: input, shape index: {}]   ;;  %s226_s7 = inlined_call_operand.vmem [shape: f32[8,1], index: 7, kind: output, shape index: {}]  }
   0x1   :  { %v143_v0 = vld [vmem:[%s219_s1 + $0x8] sm:$0xff]  ;;  %v142_v1 = vld [vmem:[%s219_s1] sm:$0xff]  ;;  %v116_v20 = vstv %s225_s6 }
   0x2   :  { %60 = vmatpush.bf16.msra.mxu0 %v143_v0  ;;  %v28_v2 = vld [vmem:[%s220_s0] sm:$0xff]  ;;  %v145_v4 = vld [vmem:[%s223_s3 + $0x8] sm:$0xff] }
   0x3   :  { %v29_v3 = vpack.c.bf16 %v28_v2, %v28_v2  ;;  %98 = vmatpush.bf16.msra.mxu1 %v145_v4  ;;  %v144_v5 = vld [vmem:[%s223_s3] sm:$0xff] }
   0x4   :  { %v146_v6 = vld [vmem:[%s221_s2] ss:$0 sm:$0xff] }
   0x5   :  { %v147_v12 = vld [vmem:[%s222_s4] ss:$0 sm:$0xff] }
   0x6   :  { %61 = vmatpush.bf16.msra.mxu0 %v142_v1  ;;  %v148_v15 = vld [vmem:[%s224_s5] ss:$0 sm:$0xff] }
   0x7   :  { %99 = vmatpush.bf16.msra.mxu1 %v144_v5 }
   0x9   :  { %132 = vmatmul.msk.bf16.vlgmr.msra.gmra.mxu0 %vm50_vm0, %v29_v3 }
  0x86   :  { %v63_v7 = vpop.f32.mrf.mxu0 }
  0x87   :  { %v64_v8 = vadd.f32 %v146_v6, %v63_v7 }
  0x89   :  { %v67_v9 = vmax.f32 %v64_v8, 0.0 }
  0x8b   :  { %v68_v10 = vpack.c.bf16 %v67_v9, %v67_v9 }
  0x8d   :  { %141 = vmatmul.msk.bf16.vlgmr.msra.gmra.mxu1 %vm50_vm0, %v68_v10 }
  0x8e   :  { %v65_v11 = vpop.f32.mrf.mxu0 }
 0x10a   :  { %v101_v13 = vpop.f32.mrf.mxu1 }
 0x10b   :  { %v102_v14 = vadd.f32 %v147_v12, %v101_v13 }
 0x10d   :  { %v105_v16 = vmax.f32 %v102_v14, 0.0 }
 0x10f   :  { %v110_v17 = vmul.f32 %v148_v15, %v105_v16 }
 0x111   :  { %v112_v18 = vsel %vm111_vm1, %v110_v17, 0.0 }
 0x112   :  { %v103_v19 = vpop.f32.mrf.mxu1  ;;  %113 = vadd.xlane.f32.xlu0 %v112_v18 }
 0x185   :  { %v114_v21 = vpop.xlane.xlu0 %113 }
 0x186   :  { %v117_v22 = vadd.f32 %v116_v20, %v114_v21 }
 0x188   :  { %119 = vst.msk [vmem:[%s226_s7] sm:$0xff] %vm118_vm2, %v117_v22 }

</bundles_post_ra>
